<compile_context>
chip_gen: v6e
topology: v6e:2x2x1
jax: 0.10.0
libtpu: 0.0.40
codegen_flags: <defaults>
</compile_context>

<pallas_src>
import functools

import jax
import jax.numpy as jnp
from jax import lax
from jax.experimental import pallas as pl
from jax.experimental.pallas import tpu as pltpu


def _mhi_kernel(x1_ref, x2_ref, w1_ref, b1_ref, w2_ref, b2_ref, o_ref, *, interact_dtype):
    # x1_ref: (1, tL1, E)   x2_ref: (1, L2, E)
    # w*_ref: (1, E, d)     b*_ref: (1, 1, d)      (per-head slices via BlockSpec)
    # o_ref : (1, 1, tL1, L2)
    x1 = x1_ref[0]                       # (tL1, E)
    x2 = x2_ref[0]                       # (L2, E)

    # Per-head linear projections on the MXU (f32 accumulate).
    p1 = jnp.dot(x1, w1_ref[0], preferred_element_type=jnp.float32) + b1_ref[0]   # (tL1, d)
    p2 = jnp.dot(x2, w2_ref[0], preferred_element_type=jnp.float32) + b2_ref[0]   # (L2, d)

    # Interaction map: contract the last (head) dim of both operands -> (tL1, L2).
    # No explicit transpose; MXU handles rhs-contracted-on-last-dim natively.
    q1 = p1.astype(interact_dtype)
    q2 = p2.astype(interact_dtype)
    maps = lax.dot_general(
        q1, q2, (((1,), (1,)), ((), ())), preferred_element_type=jnp.float32
    )
    o_ref[0, 0] = maps.astype(o_ref.dtype)


def _round_up8(v):
    return ((v + 7) // 8) * 8


def multihead_interaction(x1, x2, w1, b1, w2, b2, num_heads, *, max_l1_tile=512):
    """x1: (B, L1, E), x2: (B, L2, E); w1/w2: (P, E) torch-layout; b1/b2: (P,).

    Returns maps of shape (B, num_heads, L1, L2)  (pooling=None semantics).
    """
    B, L1, E = x1.shape
    B2, L2, E2 = x2.shape
    assert B2 == B and E2 == E
    P = w1.shape[0]
    H = num_heads
    assert P % H == 0, "project_dim must be divisible by num_heads"
    d = P // H

    x_item = jnp.dtype(x1.dtype).itemsize
    w_item = jnp.dtype(jnp.asarray(w1).dtype).itemsize
    out_item = x_item

    # --- L1 tile choice: big enough to amortize per-step overhead, small enough
    # --- for the v7x 64 MiB VMEM budget (double-buffered working set <= ~48 MiB).
    tL1 = min(L1, max_l1_tile)

    def _working_set(t):
        per_step = (
            (t * E + L2 * E) * x_item            # x1 tile + x2 (full)
            + 2 * (E * d + d) * w_item           # W1/W2 head slices + biases
            + t * L2 * out_item                  # output tile
        )
        return 2 * per_step                      # double-buffered

    while tL1 > 8 and _working_set(tL1) > (48 << 20):
        tL1 = max(8, _round_up8(tL1 // 2))
    n_l1 = pl.cdiv(L1, tL1)

    # --- Head-major weight/bias layout so BlockSpecs slice per head for free.
    # torch Linear: y = x @ W.T + b, W: (P, E). Head h uses rows [h*d, (h+1)*d).
    w1_h = jnp.asarray(w1).reshape(H, d, E).transpose(0, 2, 1)   # (H, E, d)
    w2_h = jnp.asarray(w2).reshape(H, d, E).transpose(0, 2, 1)   # (H, E, d)
    b1_h = jnp.asarray(b1).reshape(H, 1, d)
    b2_h = jnp.asarray(b2).reshape(H, 1, d)

    # bf16 interaction matmul only when inputs are already bf16 (keeps f32 exact).
    interact_dtype = jnp.bfloat16 if jnp.dtype(x1.dtype) == jnp.bfloat16 else jnp.float32

    # --- VMEM limit derived from the actual block working set (+ headroom).
    vmem_limit = int(min(max(_working_set(tL1) + (8 << 20), 16 << 20), 64 << 20))

    # --- Advisory cost estimate for XLA scheduling.
    flops = (
        2 * B * L1 * E * P                 # x1 projection
        + 2 * B * n_l1 * L2 * E * P        # x2 projection (recomputed per L1 tile)
        + 2 * B * H * L1 * L2 * d          # interaction maps
    )
    bytes_accessed = (
        B * L1 * E * x_item
        + B * n_l1 * L2 * E * x_item
        + 2 * (P * E + P) * w_item
        + B * H * L1 * L2 * out_item
    )
    cost = pl.CostEstimate(flops=int(flops), transcendentals=0,
                           bytes_accessed=int(bytes_accessed))

    kernel = functools.partial(_mhi_kernel, interact_dtype=interact_dtype)

    out = pl.pallas_call(
        kernel,
        out_shape=jax.ShapeDtypeStruct((B, H, L1, L2), x1.dtype),
        grid_spec=pltpu.PrefetchScalarGridSpec(
            num_scalar_prefetch=0,
            # h fastest so x1/x2 tiles are reused (no re-DMA) across heads.
            grid=(B, n_l1, H),
            in_specs=[
                pl.BlockSpec((1, tL1, E), lambda b, i, h: (b, i, 0)),    # x1 tile
                pl.BlockSpec((1, L2, E), lambda b, i, h: (b, 0, 0)),     # x2 (full)
                pl.BlockSpec((1, E, d), lambda b, i, h: (h, 0, 0)),      # W1 head slice
                pl.BlockSpec((1, 1, d), lambda b, i, h: (h, 0, 0)),      # b1 head slice
                pl.BlockSpec((1, E, d), lambda b, i, h: (h, 0, 0)),      # W2 head slice
                pl.BlockSpec((1, 1, d), lambda b, i, h: (h, 0, 0)),      # b2 head slice
            ],
            out_specs=pl.BlockSpec((1, 1, tL1, L2), lambda b, i, h: (b, h, i, 0)),
        ),
        compiler_params=pltpu.CompilerParams(
            dimension_semantics=("parallel", "parallel", "parallel"),
            vmem_limit_bytes=vmem_limit,
        ),
        cost_estimate=cost,
    )(x1, x2, w1_h, b1_h, w2_h, b2_h)
    return out


def _reference(x1, x2, w1, b1, w2, b2, num_heads):
    # Pure-JAX reference mirroring the PyTorch forward (pooling=None).
    P = w1.shape[0]
    d = P // num_heads
    p1 = x1 @ w1.T + b1                 # (B, L1, P)
    p2 = x2 @ w2.T + b2                 # (B, L2, P)
    B, L1, _ = p1.shape
    _, L2, _ = p2.shape
    p1 = p1.reshape(B, L1, num_heads, d).transpose(0, 2, 1, 3)   # (B, H, L1, d)
    p2 = p2.reshape(B, L2, num_heads, d).transpose(0, 2, 1, 3)   # (B, H, L2, d)
    return jnp.einsum("bhld,bhmd->bhlm", p1, p2)                 # (B, H, L1, L2)


if __name__ == "__main__":
    # Small, module-consistent shapes.
    B = 2
    L1 = 8          # sequence length of x1
    L2 = 8          # sequence length of x2
    embed_dim = 32
    project_dim = 32
    num_heads = 4

    key = jax.random.PRNGKey(0)
    k_x1, k_x2, k_w1, k_b1, k_w2, k_b2 = jax.random.split(key, 6)

    x1 = jax.random.normal(k_x1, (B, L1, embed_dim), dtype=jnp.float32)
    x2 = jax.random.normal(k_x2, (B, L2, embed_dim), dtype=jnp.float32)

    # torch nn.Linear layout: W (out, in), b (out,).
    w1 = jax.random.normal(k_w1, (project_dim, embed_dim), dtype=jnp.float32) * 0.1
    b1 = jax.random.normal(k_b1, (project_dim,), dtype=jnp.float32) * 0.1
    w2 = jax.random.normal(k_w2, (project_dim, embed_dim), dtype=jnp.float32) * 0.1
    b2 = jax.random.normal(k_b2, (project_dim,), dtype=jnp.float32) * 0.1

    out = multihead_interaction(x1, x2, w1, b1, w2, b2, num_heads)
    out = jax.block_until_ready(out)

    ref = _reference(x1, x2, w1, b1, w2, b2, num_heads)
    assert out.shape == (B, num_heads, L1, L2), out.shape
    assert jnp.allclose(out, ref, atol=1e-4, rtol=1e-4), float(jnp.max(jnp.abs(out - ref)))

    # TODO(synk): pooling='mean'/'max' branches use GlobalAveragePooling/GlobalMaxPooling,
    # which are not defined in the provided source; pooling=None (module default) is implemented.
    print("KERNEL_OK")
</pallas_src>

<mosaic_0001>
module attributes {stable_mosaic.version = 11 : i64} {
  func.func @_mhi_kernel(%arg0: i32, %arg1: i32, %arg2: i32, %arg3: memref<1x8x32xf32, #tpu.memory_space<vmem>>, %arg4: memref<1x8x32xf32, #tpu.memory_space<vmem>>, %arg5: memref<1x32x8xf32, #tpu.memory_space<vmem>>, %arg6: memref<1x1x8xf32, #tpu.memory_space<vmem>>, %arg7: memref<1x32x8xf32, #tpu.memory_space<vmem>>, %arg8: memref<1x1x8xf32, #tpu.memory_space<vmem>>, %arg9: memref<1x1x8x8xf32, #tpu.memory_space<vmem>>) attributes {dimension_semantics = [#tpu.dimension_semantics<parallel>, #tpu.dimension_semantics<parallel>, #tpu.dimension_semantics<parallel>], iteration_bounds = array<i64: 2, 1, 4>, scalar_prefetch = 0 : i64, scratch_operands = 0 : i64, tpu.core_type = #tpu.core_type<tc>, window_params = [{transform_indices = @transform_0, window_bounds = array<i64: 1, 8, 32>}, {transform_indices = @transform_1, window_bounds = array<i64: 1, 8, 32>}, {transform_indices = @transform_2, window_bounds = array<i64: 1, 32, 8>}, {transform_indices = @transform_3, window_bounds = array<i64: 1, 1, 8>}, {transform_indices = @transform_4, window_bounds = array<i64: 1, 32, 8>}, {transform_indices = @transform_5, window_bounds = array<i64: 1, 1, 8>}, {transform_indices = @transform_6, window_bounds = array<i64: 1, 1, 8, 8>}]} {
    %c0 = arith.constant 0 : index
    %c0_0 = arith.constant 0 : index
    %c0_1 = arith.constant 0 : index
    %0 = vector.load %arg3[%c0, %c0_0, %c0_1] : memref<1x8x32xf32, #tpu.memory_space<vmem>>, vector<1x8x32xf32>
    %1 = vector.shape_cast %0 : vector<1x8x32xf32> to vector<8x32xf32>
    %c0_2 = arith.constant 0 : index
    %c0_3 = arith.constant 0 : index
    %c0_4 = arith.constant 0 : index
    %2 = vector.load %arg4[%c0_2, %c0_3, %c0_4] : memref<1x8x32xf32, #tpu.memory_space<vmem>>, vector<1x8x32xf32>
    %3 = vector.shape_cast %2 : vector<1x8x32xf32> to vector<8x32xf32>
    %c0_5 = arith.constant 0 : index
    %c0_6 = arith.constant 0 : index
    %c0_7 = arith.constant 0 : index
    %4 = vector.load %arg5[%c0_5, %c0_6, %c0_7] : memref<1x32x8xf32, #tpu.memory_space<vmem>>, vector<1x32x8xf32>
    %5 = vector.shape_cast %4 : vector<1x32x8xf32> to vector<32x8xf32>
    %cst = arith.constant dense<0.000000e+00> : vector<8x8xf32>
    %6 = tpu.matmul %1, %5, %cst {dimension_numbers = #tpu.dot_dimension_numbers<[1], [0], [0], [1], [0, 0, 1, 1], [], []>} : vector<8x32xf32>, vector<32x8xf32>, vector<8x8xf32> -> vector<8x8xf32>
    %c0_8 = arith.constant 0 : index
    %c0_9 = arith.constant 0 : index
    %c0_10 = arith.constant 0 : index
    %7 = vector.load %arg6[%c0_8, %c0_9, %c0_10] : memref<1x1x8xf32, #tpu.memory_space<vmem>>, vector<1x1x8xf32>
    %8 = vector.shape_cast %7 : vector<1x1x8xf32> to vector<1x8xf32>
    %9 = vector.broadcast %8 : vector<1x8xf32> to vector<8x8xf32>
    %10 = arith.addf %6, %9 : vector<8x8xf32>
    %c0_11 = arith.constant 0 : index
    %c0_12 = arith.constant 0 : index
    %c0_13 = arith.constant 0 : index
    %11 = vector.load %arg7[%c0_11, %c0_12, %c0_13] : memref<1x32x8xf32, #tpu.memory_space<vmem>>, vector<1x32x8xf32>
    %12 = vector.shape_cast %11 : vector<1x32x8xf32> to vector<32x8xf32>
    %cst_14 = arith.constant dense<0.000000e+00> : vector<8x8xf32>
    %13 = tpu.matmul %3, %12, %cst_14 {dimension_numbers = #tpu.dot_dimension_numbers<[1], [0], [0], [1], [0, 0, 1, 1], [], []>} : vector<8x32xf32>, vector<32x8xf32>, vector<8x8xf32> -> vector<8x8xf32>
    %c0_15 = arith.constant 0 : index
    %c0_16 = arith.constant 0 : index
    %c0_17 = arith.constant 0 : index
    %14 = vector.load %arg8[%c0_15, %c0_16, %c0_17] : memref<1x1x8xf32, #tpu.memory_space<vmem>>, vector<1x1x8xf32>
    %15 = vector.shape_cast %14 : vector<1x1x8xf32> to vector<1x8xf32>
    %16 = vector.broadcast %15 : vector<1x8xf32> to vector<8x8xf32>
    %17 = arith.addf %13, %16 : vector<8x8xf32>
    %cst_18 = arith.constant dense<0.000000e+00> : vector<8x8xf32>
    %18 = tpu.matmul %10, %17, %cst_18 {dimension_numbers = #tpu.dot_dimension_numbers<[1], [1], [0], [0], [0, 0, 1, 0], [], []>} : vector<8x8xf32>, vector<8x8xf32>, vector<8x8xf32> -> vector<8x8xf32>
    %c0_19 = arith.constant 0 : index
    %c0_20 = arith.constant 0 : index
    %c0_21 = arith.constant 0 : index
    %c0_22 = arith.constant 0 : index
    %19 = vector.load %arg9[%c0_19, %c0_20, %c0_21, %c0_22] : memref<1x1x8x8xf32, #tpu.memory_space<vmem>>, vector<1x1x8x8xf32>
    %20 = vector.shape_cast %19 : vector<1x1x8x8xf32> to vector<8x8xf32>
    %21 = vector.shape_cast %18 : vector<8x8xf32> to vector<1x1x8x8xf32>
    tpu.vector_store %arg9[%c0_19, %c0_20, %c0_21, %c0_22], %21 {strides = array<i32>} : memref<1x1x8x8xf32, #tpu.memory_space<vmem>>, vector<1x1x8x8xf32>,
    return
  }
  func.func @transform_0(%arg0: i32, %arg1: i32, %arg2: i32) -> (i32, i32, i32) {
    %c0_i32 = arith.constant 0 : i32
    %c0_i32_0 = arith.constant 0 : i32
    return %arg0, %arg1, %c0_i32 : i32, i32, i32
  }
  func.func @transform_1(%arg0: i32, %arg1: i32, %arg2: i32) -> (i32, i32, i32) {
    %c0_i32 = arith.constant 0 : i32
    %c0_i32_0 = arith.constant 0 : i32
    %c0_i32_1 = arith.constant 0 : i32
    return %arg0, %c0_i32, %c0_i32_0 : i32, i32, i32
  }
  func.func @transform_2(%arg0: i32, %arg1: i32, %arg2: i32) -> (i32, i32, i32) {
    %c0_i32 = arith.constant 0 : i32
    %c0_i32_0 = arith.constant 0 : i32
    %c0_i32_1 = arith.constant 0 : i32
    return %arg2, %c0_i32, %c0_i32_0 : i32, i32, i32
  }
  func.func @transform_3(%arg0: i32, %arg1: i32, %arg2: i32) -> (i32, i32, i32) {
    %c0_i32 = arith.constant 0 : i32
    %c0_i32_0 = arith.constant 0 : i32
    %c0_i32_1 = arith.constant 0 : i32
    return %arg2, %c0_i32, %c0_i32_0 : i32, i32, i32
  }
  func.func @transform_4(%arg0: i32, %arg1: i32, %arg2: i32) -> (i32, i32, i32) {
    %c0_i32 = arith.constant 0 : i32
    %c0_i32_0 = arith.constant 0 : i32
    %c0_i32_1 = arith.constant 0 : i32
    return %arg2, %c0_i32, %c0_i32_0 : i32, i32, i32
  }
  func.func @transform_5(%arg0: i32, %arg1: i32, %arg2: i32) -> (i32, i32, i32) {
    %c0_i32 = arith.constant 0 : i32
    %c0_i32_0 = arith.constant 0 : i32
    %c0_i32_1 = arith.constant 0 : i32
    return %arg2, %c0_i32, %c0_i32_0 : i32, i32, i32
  }
  func.func @transform_6(%arg0: i32, %arg1: i32, %arg2: i32) -> (i32, i32, i32, i32) {
    %c0_i32 = arith.constant 0 : i32
    %c0_i32_0 = arith.constant 0 : i32
    return %arg0, %arg2, %arg1, %c0_i32 : i32, i32, i32, i32
  }
}

</mosaic_0001>

<bundles_post_ra>
// kernel: tpu_custom_call.1
= control target key start
LH: loop header
LB: loop body
LE: loop exit
PB: predicated region body
PF: predicated region fallthrough
CT: control target
= control target key end

     0   :  { %s1196_s0 = inlined_call_operand.vmem [shape: f32[2,8,32], index: 0, kind: input, shape index: {}]   ;;  %s1197_s1 = inlined_call_operand.vmem [shape: f32[2,8,32], index: 1, kind: input, shape index: {}]   ;;  %s1198_s2 = inlined_call_operand.vmem [shape: f32[4,32,8], index: 2, kind: input, shape index: {}]   ;;  %s1199_s3 = inlined_call_operand.vmem [shape: f32[4,1,8], index: 3, kind: input, shape index: {}]   ;;  %s1200_s4 = inlined_call_operand.vmem [shape: f32[4,32,8], index: 4, kind: input, shape index: {}]   ;;  %s1201_s5 = inlined_call_operand.vmem [shape: f32[4,1,8], index: 5, kind: input, shape index: {}]   ;;  %s1202_s6 = inlined_call_operand.hbm [shape: f32[2,4,8,8], index: 6, kind: output, shape index: {}]  }
   0x1   :  { %1204 = sst [smem:[#allocation6_spill]] %s1200_s4 }
   0x2   :  { %11 = vsyncpa [#allocation3], 0 }
   0x3   :  { %13 = vsyncpa [#allocation3 + $0x1], 0  ;;  %s1034_s21 = smov 0   ;;  %s1036_s22 = smov 0  }
   0x4   :  { %s1038_s23 = smov 0   ;;  %s1040_s24 = smov 0  }
   0x5   :  { %s1042_s25 = smov 0   ;;  %s1044_s26 = smov 0  }
   0x6   :  { %s1046_s27 = smov 0   ;;  %s1048_s28 = smov 0  }
   0x7 LB: > { %s765_s29 = sadd.s32 4294967295, %s994_s28   ;;  %s766_s30 = sadd.s32 4294967294, %s994_s28   ;;  %s994_s28 = sphi %s1048_s28, %s19_s28   ;;  %s990_s27 = sphi %s1046_s27, %s1216_s27   ;;  %s986_s26 = sphi %s1044_s26, %s1215_s26   ;;  %s982_s25 = sphi %s1042_s25, %s1214_s25   ;;  %s978_s24 = sphi %s1040_s24, %s1213_s24   ;;  %s974_s23 = sphi %s1038_s23, %s1212_s23   ;;  %s970_s22 = sphi %s1036_s22, %s1211_s22   ;;  %s966_s21 = sphi %s1034_s21, %s1210_s21  }
   0x8   : > { %s31_s7 = sadd.s32 1, %s986_s26  ;;  %s38_s8 = sadd.s32 1, %s990_s27 }
   0x9   : > { %p32_p0 = scmp.ge.s32.totalorder %s31_s7, 4  ;;  %p217_p1 = scmp.ne.s32.totalorder %s974_s23, %s970_s22 }
   0xa   : > { %p218_p2 = scmp.eq.s32.totalorder %s765_s29, 7  ;;  %p223_p5 = scmp.ne.s32.totalorder %s970_s22, %s966_s21 }
   0xb   : > { %s1218_s7 = smov (%p32_p0, %s31_s7), 0  ;;  %s1220_s8 = smov (!%p32_p0, %s38_s8), %s990_s27 }
   0xc   : > { %s201_s9 = ssub.s32 %s986_s26, %s1218_s7  ;;  %p1085_p3 = por %p218_p2, %p217_p1 }
   0xd   : > { %p40_p4 = scmp.ge.s32.totalorder %s1220_s8, 2  ;;  %p224_p6 = scmp.eq.s32.totalorder %s766_s30, 7 }
   0xe   : > { %p769_p7 = scmp.ge.s32.totalorder %s994_s28, 1  ;;  %p287_p9 = scmp.lt.s32.totalorder %s994_s28, 9 }
   0xf   : > { %s1222_s8 = smov (%p40_p4, %s1220_s8), 0  ;;  %p1094_p8 = por %p224_p6, %p223_p5 }
  0x10   : > { %1206 = sst [smem:[#allocation5_spill]] %s1222_s8  ;;  %s200_s12 = ssub.s32 %s990_s27, %s1222_s8 }
  0x11   : > { %s207_s13 = sadd.s32 1, %s974_s23  ;;  %s202_s14 = sor.u32 %s201_s9, %s200_s12 }
  0x12   : > { %p288_p10 = pnand %p769_p7, %p287_p9  ;;  %p205_p11 = scmp.eq.s32.totalorder %s202_s14, 0 }
  0x13   : > { %p350_p12 = scmp.lt.s32.totalorder (!%p288_p10), %s978_s24, 3  ;;  %p339_p13 = scmp.lt.s32.totalorder (!%p288_p10), %s982_s25, 1 }
  0x14   : > { %s1103_s15 = scalar_select %p205_p11, %s974_s23, %s207_s13  }
  0x15   : > { %291 = sbr.rel (%p288_p10) target bundleno = 443 (0x1bb), region = 44  ;;  %s1208_s4 = sld [smem:[#allocation6_spill]] (!%p288_p10) }
  0x16   : > { %s784_s14 = sshll.u32 (!%p288_p10), %s982_s25, 2 }
  0x1a   : > { %v996_v0 = vmov 0.0   ;;  %s1108_s16 = scalar_select %p350_p12, %s978_s24, 3  ;;  %vm997_vm0 = vmmov 0   ;;  %vm379_vm1 = vcmask 261120   ;;  %vm537_vm2 = vcmask 64512  }
  0x1b   : > { %813 = vmatprep.subr.mxu1 %v996_v0  ;;  %802 = vmatprep.subr.mxu0 %v996_v0  ;;  %s340_s17 = scalar_select %p339_p13, %s982_s25, 1 }
  0x1c   : > { %821 = vmatprep.mubr.msk.f32.mxu1 %vm997_vm0, %v996_v0  ;;  %810 = vmatprep.mubr.msk.f32.mxu0 %vm997_vm0, %v996_v0  ;;  %s788_s18 = sshll.u32 %s1108_s16, 5  ;;  %s357_s9 = scalar_lea.vmem %s1199_s3, %s1108_s16 }
  0x1d   : > { %s362_s29 = scalar_lea.vmem %s1208_s4, %s788_s18  ;;  %s354_s12 = scalar_lea.vmem %s1198_s2, %s788_s18  ;;  %v777_v12 = vld [vmem:[%s357_s9] ss:$0 sm:$0xff] }
  0x1e   : > { %v456_v1 = vld [vmem:[%s362_s29 + $0x18] sm:$0xff]  ;;  %v455_v3 = vld [vmem:[%s362_s29 + $0x10] sm:$0xff]  ;;  %s771_s13 = sshll.u32 %s340_s17, 3  ;;  %v454_v5 = vld [vmem:[%s362_s29 + $0x8] sm:$0xff]  ;;  %s365_s17 = scalar_lea.vmem %s1201_s5, %s1108_s16 }
  0x1f   : > { %v371_v2 = vld [vmem:[%s354_s12 + $0x18] sm:$0xff]  ;;  %814 = vmatpush3.msra.mxu1 %v456_v1  ;;  %v370_v4 = vld [vmem:[%s354_s12 + $0x10] sm:$0xff]  ;;  %v369_v6 = vld [vmem:[%s354_s12 + $0x8] sm:$0xff]  ;;  %s349_s19 = scalar_lea.vmem %s1197_s1, %s771_s13  ;;  %s345_s30 = scalar_lea.vmem %s1196_s0, %s771_s13 }
  0x20   : > { %803 = vmatpush3.msra.mxu0 %v371_v2  ;;  %815 = vmatprep.subr.mxu1 %v996_v0  ;;  %v453_v7 = vld [vmem:[%s362_s29] sm:$0xff] }
  0x21   : > { %804 = vmatprep.subr.mxu0 %v996_v0  ;;  %816 = vmatpush3.msra.mxu1 %v455_v3  ;;  %v368_v8 = vld [vmem:[%s354_s12] sm:$0xff]  ;;  %s336_s12 = sand.u32 1, %s970_s22  }
  0x22   : > { %805 = vmatpush3.msra.mxu0 %v370_v4  ;;  %817 = vmatprep.subr.mxu1 %v996_v0  ;;  %v367_v9 = vld [vmem:[%s349_s19] sm:$0xff]  ;;  %s770_s13 = sshll.u32 %s336_s12, 3  ;;  %s628_s19 = sadd.s32 %s978_s24, %s784_s14 }
  0x23   : > { %806 = vmatprep.subr.mxu0 %v996_v0  ;;  %818 = vmatpush3.msra.mxu1 %v454_v5  ;;  %v366_v10 = vld [vmem:[%s345_s30] sm:$0xff]  ;;  %s785_s20 = sshll.u32 %s628_s19, 7  ;;  %s338_s16 = scalar_lea.vmem [#allocation2], %s770_s13 }
  0x24   : > { %807 = vmatpush3.msra.mxu0 %v369_v6  ;;  %819 = vmatprep.subr.mxu1 %v996_v0  ;;  %v779_v11 = vld [vmem:[%s365_s17] ss:$0 sm:$0xff]  ;;  %s632_s30 = sshll.u32 %s338_s16, 4  ;;  %s1143_s17 = scalar_lea.hbm %s1202_s6, %s785_s20  ;;  %s1145_s30 = int_to_ptr.vmem [resolvable:$true] %s632_s30 }
  0x25   : > { %808 = vmatprep.subr.mxu0 %v996_v0  ;;  %820 = vmatpush3.msra.mxu1 %v453_v7  ;;  %s616_s18 = scalar_lea.sflag [#allocation3], %s336_s12  ;;  %s902_s25 = scalar_lea.vmem %s1145_s30, 128 }
  0x26   : > { %809 = vmatpush3.msra.mxu0 %v368_v8  ;;  %822 = vmatmul.mubr.msk.f32.vlgmr.msra.gmra.mxu1 %vm379_vm1, %v367_v9  ;;  %p903_p0 = scmp.ne.s32.totalorder %s1145_s30, %s902_s25  ;;  %s998_s24 = smov [#allocation2]  }
  0x27   : > { %811 = vmatmul.mubr.msk.f32.vlgmr.msra.gmra.mxu0 %vm379_vm1, %v366_v10  ;;  %824 = vmatprep.subr.mxu0 %v996_v0  ;;  %s906_s29 = sshll.u32 %s998_s24, 4  ;;  %s907_s29 = int_to_ptr.vmem [resolvable:$false] %s906_s29 }
  0x28   : > { %826 = vmatprep.mubr.msk.f32.mxu0 %vm997_vm0, %v996_v0  ;;  %p904_p1 = pnand %p903_p0, %p1085_p3  ;;  %s908_s9 = scalar_lea.vmem %s907_s29, 256 }
  0x29   : > { %p909_p4 = scmp.lt.s32.totalorder %s1145_s30, %s907_s29  ;;  %p910_p5 = scmp.lt.s32.totalorder %s908_s9, %s902_s25 }
  0x2a   : > { %p905_p2 = pneg %p904_p1 }
  0x2b   : > { %p911_p6 = por %p910_p5, %p909_p4 }
  0x2d   : > { %p912_p7 = pnand %p911_p6, %p905_p2 }
  0xe6   : > { %v533_v13 = vpop.f32.mrf.mxu1 }
  0xe7   : > { %v449_v14 = vpop.f32.mrf.mxu0  ;;  %v534_v15 = vadd.f32 %v779_v11, %v533_v13 }
  0xe8   : > { %v450_v16 = vadd.f32 %v777_v12, %v449_v14  ;;  %v823_v17 = vpop.f32.mrf.mxu1 }
  0xe9   : > { %v812_v18 = vpop.f32.mrf.mxu0  ;;  %825 = vmatpush3.xpose.msk.msra.mxu0 %vm537_vm2, %v534_v15 }
  0xec   : > { %827 = vmatmul.mubr.msk.f32.vlgmr.msra.gmra.mxu0 %vm537_vm2, %v450_v16 }
 0x1ac   : > { %v610_v19 = vpop.f32.mrf.mxu0 }
 0x1ad   : > { %614 = vst.msk [vmem:[%s338_s16] sm:$0xff] %vm537_vm2, %v610_v19 }
 0x1ae   : > { %v828_v20 = vpop.f32.mrf.mxu0 }
 0x1af   : > { %915 = shalt.err (!%p912_p7)
}
 0x1b0   : > { %s916_s13 = scalar_lea.hbm %s1143_s17, 128  ;;  %s920_s19 = scalar_lea.hbm %s1202_s6, 1024 }
 0x1b1   : > { %p917_p9 = scmp.ne.s32.totalorder %s1143_s17, %s916_s13  ;;  %p921_p12 = scmp.lt.s32.totalorder %s1143_s17, %s1202_s6 }
 0x1b2   : > { %p922_p13 = scmp.lt.s32.totalorder %s920_s19, %s916_s13 }
 0x1b3   : > { %p918_p10 = pnand %p917_p9, %p1085_p3 }
 0x1b4   : > { %p923_p0 = por %p922_p13, %p921_p12 }
 0x1b5   : > { %p919_p11 = pneg %p918_p10 }
 0x1b7   : > { %p924_p1 = pnand %p923_p0, %p919_p11 }
 0x1b9   : > { %927 = shalt.err (!%p924_p1)
}
 0x1ba   : > { %829 = dma.vmem_to_hbm [thread:$0]  (%p1085_p3), %s1145_s30, 128, %s1143_s17, %s616_s18  }
 0x1bb PF: > { %p835_p2 = scmp.ge.s32.totalorder %s994_s28, 2  ;;  %s644_s4 = sand.u32 1, %s966_s21  }
 0x1bc   : > { %s645_s8 = scalar_lea.sflag [#allocation3], %s644_s4 }
 0x1bd   : > { %p832_p4 = pnand %p835_p2, %p1094_p8 }
 0x1bf   : > { %p833_p5 = pneg %p832_p4 }
 0x1c1   : > { %961 = dma.done.wait (%p833_p5), %s645_s8, 128  }
 0x1c2   : > { %963 = vsyncadd (%p833_p5), %s645_s8, 4294967168  ;;  %s19_s28 = sadd.s32 1, %s994_s28   ;;  %s1209_s10 = sld [smem:[#allocation5_spill]] }
 0x1c3   : > { %p16_p6 = scmp.ge.s32.totalorder %s19_s28, 10   ;;  %s1210_s21 = smov %s970_s22 }
 0x1c4   : > { %s1211_s22 = smov %s974_s23  ;;  %s1212_s23 = smov %s1103_s15 }
 0x1c5   : > { %s1213_s24 = smov %s986_s26  ;;  %s1214_s25 = smov %s990_s27 }
 0x1c6   : > { %s1215_s26 = smov %s1218_s7  ;;  %18 = sbr.rel (!%p16_p6) target bundleno = 7 (0x7), region = 94 }
 0x1c8   : > { %s1216_s27 = smov %s1209_s10 }
 0x1cb   :  { %650 = vsyncpa [#allocation3], 1 }
 0x1cc   :  { %652 = vsyncpa [#allocation3 + $0x1], 1 }

</bundles_post_ra>
